<compile_context>
chip_gen: v5e
topology: v5e:2x2
jax: 0.10.0
libtpu: 0.0.40
codegen_flags: <defaults>
</compile_context>

<pallas_src>
import functools

import jax
import jax.numpy as jnp
from jax.experimental import pallas as pl
from jax.experimental.pallas import tpu as pltpu


def gating_kernel(x_ref, w_ref, b_ref, o_ref):
    # x_ref: (TR, D)   w_ref: (D, E)   b_ref: (1, E)   o_ref: (TR, E)
    # MXU matmul with f32 accumulation, natural NN layout (rhs stationary).
    logits = jnp.dot(x_ref[...], w_ref[...], preferred_element_type=jnp.float32)
    logits = logits + b_ref[...].astype(jnp.float32)

    # Numerically-stable softmax over the expert axis, all in f32.
    m = jnp.max(logits, axis=-1, keepdims=True)
    e = jnp.exp(logits - m)
    denom = jnp.sum(e, axis=-1, keepdims=True)
    # Exact reciprocal (EUP): MoE gate rows must sum to 1.
    inv = pl.reciprocal(denom, approx=False)
    o_ref[...] = (e * inv).astype(o_ref.dtype)


@functools.partial(jax.jit, static_argnames=("row_tile",))
def gating_network(x, weight, bias, *, row_tile=4096):
    """x: (B, S, D); weight: (E, D); bias: (E,)  ->  (B, S, E)."""
    B, S, D = x.shape
    E = weight.shape[0]
    R = B * S
    itemsize = x.dtype.itemsize

    # ---- wrapper-side layout prep: no padding, no copies of x --------------
    x2d = x.reshape(R, D)
    wT = weight.T                    # (D, E): tiny one-time transpose -> NN matmul
    b2d = bias.reshape(1, E)

    # Row tile: multiple of the sublane packing (8 rows f32, 16 bf16, ...).
    # Large enough to amortize per-grid-step overhead, small enough that the
    # double-buffered x stream stays under ~32 MiB (fits v7x's 64 MiB/TC VMEM)
    # and -- when R allows -- at least 2 grid steps exist so v7x's two
    # TensorCores both get work under dimension_semantics=("parallel",).
    sub = 8 * max(1, 4 // itemsize)
    tr = min(row_tile, R)
    if R >= 2 * sub:
        tr = min(tr, (R + 1) // 2)                       # >= 2 grid steps
    tr = min(tr, max(sub, (32 << 20) // (2 * D * itemsize)))  # x dbl-buf cap
    if tr < R:
        tr = max(sub, (tr // sub) * sub)                 # sublane multiple
    # else tr == R: block dim equals the full array dim, always legal.
    num_tiles = pl.cdiv(R, tr)                           # ragged last block OK

    # VMEM budget: double-buffered x stream + lane-padded f32 softmax temps /
    # output buffers + resident weight + slack.  Never below the 32 MiB
    # default, never above 56 MiB (safe on v7x's 64 MiB/TC).
    Dl = ((D + 127) // 128) * 128
    vmem_estimate = int(
        2 * tr * Dl * itemsize          # double-buffered x tiles
        + 8 * tr * 128 * 4              # f32 logits/exp temps + out buffers
        + 2 * Dl * 128 * itemsize       # resident weight (lane-padded)
        + (8 << 20)                     # slack
    )
    vmem_bytes = min(max(vmem_estimate, 32 << 20), 56 << 20)

    out2d = pl.pallas_call(
        gating_kernel,
        out_shape=jax.ShapeDtypeStruct((R, E), x.dtype),
        grid_spec=pltpu.PrefetchScalarGridSpec(
            num_scalar_prefetch=0,
            grid=(num_tiles,),
            in_specs=[
                pl.BlockSpec((tr, D), lambda i: (i, 0)),   # streamed x rows
                pl.BlockSpec((D, E), lambda i: (0, 0)),    # resident weight
                pl.BlockSpec((1, E), lambda i: (0, 0)),    # resident bias
            ],
            out_specs=pl.BlockSpec((tr, E), lambda i: (i, 0)),
        ),
        compiler_params=pltpu.CompilerParams(
            # Rows are independent (per-row softmax) -> grid steps can split
            # across v7x's two TensorCores; harmless on v5e/v6e.
            dimension_semantics=("parallel",),
            vmem_limit_bytes=vmem_bytes,
        ),
    )(x2d, wT, b2d)

    return out2d.reshape(B, S, E)


if __name__ == "__main__":
    # Small shapes consistent with the module's forward: (batch, seq, input_dim).
    B, S, D, E = 2, 8, 32, 4

    key = jax.random.PRNGKey(0)
    kx, kw, kb = jax.random.split(key, 3)

    x = jax.random.normal(kx, (B, S, D), dtype=jnp.float32)
    # Deterministic synthetic parameters for nn.Linear(D, E).
    weight = jax.random.normal(kw, (E, D), dtype=jnp.float32) * 0.1
    bias = jax.random.normal(kb, (E,), dtype=jnp.float32) * 0.1

    # Defaults already give a multi-step grid here (R=16 -> tr=8, 2 tiles,
    # both full -- no ragged block needed for this demo).
    out = gating_network(x, weight, bias)
    jax.block_until_ready(out)

    # Plain-JAX reference (exact softmax).
    ref = jax.nn.softmax(jnp.einsum("bsd,ed->bse", x, weight) + bias, axis=2)
    assert out.shape == (B, S, E)
    assert jnp.allclose(out, ref, atol=2e-3, rtol=2e-3)
    # Exact reciprocal in the kernel -> rows sum to 1 to f32 rounding.
    assert jnp.allclose(jnp.sum(out, axis=-1), 1.0, atol=1e-4)

    print("KERNEL_OK")
</pallas_src>

<mosaic_0001>
module attributes {stable_mosaic.version = 11 : i64} {
  func.func @gating_kernel(%arg0: i32, %arg1: memref<8x32xf32, #tpu.memory_space<vmem>>, %arg2: memref<32x4xf32, #tpu.memory_space<vmem>>, %arg3: memref<1x4xf32, #tpu.memory_space<vmem>>, %arg4: memref<8x4xf32, #tpu.memory_space<vmem>>) attributes {dimension_semantics = [#tpu.dimension_semantics<parallel>], iteration_bounds = array<i64: 2>, scalar_prefetch = 0 : i64, scratch_operands = 0 : i64, tpu.core_type = #tpu.core_type<tc>, window_params = [{transform_indices = @transform_0, window_bounds = array<i64: 8, 32>}, {pipeline_mode = #tpu.pipeline_mode<synchronous>, transform_indices = @transform_1, window_bounds = array<i64: 32, 4>}, {pipeline_mode = #tpu.pipeline_mode<synchronous>, transform_indices = @transform_2, window_bounds = array<i64: 1, 4>}, {transform_indices = @transform_3, window_bounds = array<i64: 8, 4>}]} {
    %c0 = arith.constant 0 : index
    %c0_0 = arith.constant 0 : index
    %0 = vector.load %arg1[%c0, %c0_0] : memref<8x32xf32, #tpu.memory_space<vmem>>, vector<8x32xf32>
    %c0_1 = arith.constant 0 : index
    %c0_2 = arith.constant 0 : index
    %1 = vector.load %arg2[%c0_1, %c0_2] : memref<32x4xf32, #tpu.memory_space<vmem>>, vector<32x4xf32>
    %cst = arith.constant dense<0.000000e+00> : vector<8x4xf32>
    %2 = tpu.matmul %0, %1, %cst {dimension_numbers = #tpu.dot_dimension_numbers<[1], [0], [0], [1], [0, 0, 1, 1], [], []>} : vector<8x32xf32>, vector<32x4xf32>, vector<8x4xf32> -> vector<8x4xf32>
    %c0_3 = arith.constant 0 : index
    %c0_4 = arith.constant 0 : index
    %3 = vector.load %arg3[%c0_3, %c0_4] : memref<1x4xf32, #tpu.memory_space<vmem>>, vector<1x4xf32>
    %4 = vector.broadcast %3 : vector<1x4xf32> to vector<8x4xf32>
    %5 = arith.addf %2, %4 : vector<8x4xf32>
    %cst_5 = arith.constant dense<0xFF800000> : vector<8xf32>
    %6 = vector.multi_reduction <maximumf>, %5, %cst_5 [1] : vector<8x4xf32> to vector<8xf32>
    %7 = vector.shape_cast %6 : vector<8xf32> to vector<8x1xf32>
    %8 = vector.broadcast %7 : vector<8x1xf32> to vector<8x4xf32>
    %9 = arith.subf %5, %8 : vector<8x4xf32>
    %10 = math.exp %9 : vector<8x4xf32>
    %cst_6 = arith.constant dense<0.000000e+00> : vector<8xf32>
    %11 = vector.multi_reduction <add>, %10, %cst_6 [1] : vector<8x4xf32> to vector<8xf32>
    %12 = vector.shape_cast %11 : vector<8xf32> to vector<8x1xf32>
    %13 = tpu.reciprocal %12 : vector<8x1xf32> -> vector<8x1xf32>
    %14 = vector.broadcast %13 : vector<8x1xf32> to vector<8x4xf32>
    %15 = arith.mulf %10, %14 : vector<8x4xf32>
    %c0_7 = arith.constant 0 : index
    %c0_8 = arith.constant 0 : index
    %16 = vector.load %arg4[%c0_7, %c0_8] : memref<8x4xf32, #tpu.memory_space<vmem>>, vector<8x4xf32>
    tpu.vector_store %arg4[%c0_7, %c0_8], %15 {strides = array<i32>} : memref<8x4xf32, #tpu.memory_space<vmem>>, vector<8x4xf32>,
    return
  }
  func.func @transform_0(%arg0: i32) -> (i32, i32) {
    %c0_i32 = arith.constant 0 : i32
    %c0_i32_0 = arith.constant 0 : i32
    return %arg0, %c0_i32 : i32, i32
  }
  func.func @transform_1(%arg0: i32) -> (i32, i32) {
    %c0_i32 = arith.constant 0 : i32
    %c0_i32_0 = arith.constant 0 : i32
    %c0_i32_1 = arith.constant 0 : i32
    return %c0_i32, %c0_i32_0 : i32, i32
  }
  func.func @transform_2(%arg0: i32) -> (i32, i32) {
    %c0_i32 = arith.constant 0 : i32
    %c0_i32_0 = arith.constant 0 : i32
    %c0_i32_1 = arith.constant 0 : i32
    return %c0_i32, %c0_i32_0 : i32, i32
  }
  func.func @transform_3(%arg0: i32) -> (i32, i32) {
    %c0_i32 = arith.constant 0 : i32
    %c0_i32_0 = arith.constant 0 : i32
    return %arg0, %c0_i32 : i32, i32
  }
}

</mosaic_0001>

<bundles_post_ra>
// kernel: gating_network.1
= control target key start
LH: loop header
LB: loop body
LE: loop exit
PB: predicated region body
PF: predicated region fallthrough
CT: control target
= control target key end

     0   :  { %s329_s12 = smov 0   ;;  %s371_s0 = inlined_call_operand.vmem [shape: f32[16,32], index: 0, kind: input, shape index: {}]   ;;  %s372_s1 = inlined_call_operand.vmem [shape: f32[32,4], index: 1, kind: input, shape index: {}]   ;;  %s373_s2 = inlined_call_operand.vmem [shape: f32[1,4], index: 2, kind: input, shape index: {}]   ;;  %s374_s3 = inlined_call_operand.vmem [shape: f32[16,4], index: 3, kind: output, shape index: {}]  }
   0x1 LB: > { %s278_s13 = sadd.s32 4294967295, %s307_s12   ;;  %p282_p0 = scmp.ge.s32.totalorder %s307_s12, 1  ;;  %s307_s12 = sphi %s329_s12, %s13_s12  }
   0x2   : > { %p136_p1 = scmp.lt.s32.totalorder %s307_s12, 3 }
   0x4   : > { %p137_p2 = pnand %p282_p0, %p136_p1 }
   0x5   : > { %p158_p3 = scmp.lt.s32.totalorder (!%p137_p2), %s278_s13, 1 }
   0x6   : > { %140 = sbr.rel (%p137_p2) target bundleno = 412 (0x19c), region = 32 }
   0xb   : > { %v170_v0 = vld [vmem:[%s372_s1 + $0x18] sm:$0xff]  ;;  %v169_v1 = vld [vmem:[%s372_s1 + $0x10] sm:$0xff]  ;;  %v168_v2 = vld [vmem:[%s372_s1 + $0x8] sm:$0xff]  ;;  %s376_s13 = smov (!%p158_p3, %s278_s13), 1  ;;  %vm175_vm0 = vcmask 261120   ;;  %vm199_vm1 = vcmask 31744  }
   0xc   : > { %191 = vmatpush.msra.mxu0 %v170_v0  ;;  %v167_v3 = vld [vmem:[%s372_s1] sm:$0xff]  ;;  %s283_s22 = sshll.u32 %s376_s13, 3 }
   0xd   : > { %s161_s25 = scalar_lea.vmem %s371_s0, %s283_s22  ;;  %v296_v5 = vld [vmem:[%s373_s2] ss:$0 sm:$0xff]  ;;  %s165_s30 = scalar_lea.vmem %s374_s3, %s283_s22 }
   0xe   : > { %192 = vmatpush.msra.mxu0 %v169_v1  ;;  %v166_v4 = vld [vmem:[%s161_s25] sm:$0xff] }
  0x10   : > { %193 = vmatpush.msra.mxu0 %v168_v2 }
  0x12   : > { %194 = vmatpush.msra.mxu0 %v167_v3 }
  0x13   : > { %285 = vmatmul.msk.f32.vlgmr.msra.gmra.mxu0 %vm175_vm0, %v166_v4 }
  0x90   : > { %v196_v6 = vpop.f32.mrf.mxu0 }
  0x91   : > { %v197_v7 = vadd.f32 %v296_v5, %v196_v6 }
  0x93   : > { %v200_v8 = vsel %vm199_vm1, %v197_v7, -inf }
  0x94   : > { %201 = vmax.xlane.f32.xlu0 %v200_v8 }
 0x107   : > { %v202_v9 = vpop.xlane.xlu0 %201 }
 0x108   : > { %v203_v10 = vsub.f32 %v197_v7, %v202_v9 }
 0x10a   : > { %v204_v11 = vmul.f32 1.442695, %v203_v10 }
 0x10c   : > { %297 = vpow2.f32 %v204_v11 }
 0x112   : > { %v298_v12 = vpop.eup %297 }
 0x113   : > { %v206_v13 = vsel %vm199_vm1, %v298_v12, 0.0 }
 0x114   : > { %207 = vadd.xlane.f32.xlu0 %v206_v13 }
 0x187   : > { %v208_v14 = vpop.xlane.xlu0 %207 }
 0x188   : > { %299 = vrcp.f32 %v208_v14  ;;  %v220_v18 = vand.u32 2147483648, %v208_v14  ;;  %v218_v20 = vand.u32 2147483647, %v208_v14  ;;  %vm214_vm3 = vweird.f32 %v208_v14 }
 0x18a   : > { %v221_v22 = vor.u32 1.1754944e-38, %v220_v18  ;;  %vm219_vm5 = vcmp.eq.f32.partialorder %v218_v20, 8.507059e+37 }
 0x18e   : > { %v300_v15 = vpop.eup %299 }
 0x18f   : > { %v210_v16 = vmul.f32 %v300_v15, %v208_v14  ;;  %vm215_vm2 = vweird.f32 %v300_v15 }
 0x190   : > { %vm216_vm4 = vmor %vm214_vm3, %vm215_vm2 }
 0x191   : > { %v211_v17 = vsub.f32 1.0, %v210_v16 }
 0x193   : > { %v212_v19 = vmul.f32 %v300_v15, %v211_v17 }
 0x195   : > { %v213_v21 = vadd.f32 %v300_v15, %v212_v19 }
 0x197   : > { %v217_v23 = vsel %vm216_vm4, %v300_v15, %v213_v21 }
 0x198   : > { %v222_v24 = vsel %vm219_vm5, %v221_v22, %v217_v23 }
 0x199   : > { %v223_v25 = vmul.f32 %v298_v12, %v222_v24 }
 0x19b   : > { %224 = vst.msk [vmem:[%s165_s30] sm:$0xff] %vm199_vm1, %v223_v25 }
 0x19c PF: > { %s13_s12 = sadd.s32 1, %s307_s12  }
 0x19d   : > { %p10_p4 = scmp.ge.s32.totalorder %s13_s12, 4  }
 0x19f   :  { %12 = sbr.rel (!%p10_p4) target bundleno = 1 (0x1), region = 62 }

</bundles_post_ra>
